<compile_context>
chip_gen: v6e
topology: v6e:2x2x1
jax: 0.10.0
libtpu: 0.0.40
codegen_flags: <defaults>
</compile_context>

<pallas_src>
import numpy as np
import jax
import jax.numpy as jnp
from jax.experimental import pallas as pl
from jax.experimental.pallas import tpu as pltpu


def _round_up(a, b):
    return (a + b - 1) // b * b


def _make_kernel(ncaps, hidden):
    def kernel(s_ref, x_ref, wt_ref, b_ref, out_ref, acc_ref):
        # s_ref  : (ncaps, TM, TK) bf16   selection(+residual) tiles
        # x_ref  : (TK, D)        f32     node-feature table tile
        # wt_ref : (D, D)         f32     weight.T (resident)
        # b_ref  : (1, D)         f32     bias (resident)
        # out_ref: (TM, D)        f32     output row tile (written once)
        # acc_ref: (TM, D)        f32     VMEM accumulator (z + x), per row tile
        k = pl.program_id(1)

        @pl.when(k == 0)
        def _init():
            acc_ref[...] = jnp.zeros_like(acc_ref)

        # Per-capsule aggregation matmuls; concat to a lane-dense (TM, D) slab
        # so the accumulator is updated with a single full-width store.
        parts = []
        for c in range(ncaps):  # static unroll; ncaps is small
            parts.append(
                jnp.dot(s_ref[c].astype(jnp.float32),
                        x_ref[:, c * hidden:(c + 1) * hidden],
                        preferred_element_type=jnp.float32))
        acc_ref[...] += jnp.concatenate(parts, axis=-1)

        @pl.when(k == pl.num_programs(1) - 1)
        def _finalize():
            # Single full-K linear matmul, fused bias + ReLU, one output write.
            h = jnp.dot(acc_ref[...], wt_ref[...],
                        preferred_element_type=jnp.float32)
            out_ref[...] = jnp.maximum(h + b_ref[...], 0.0)

    return kernel


def aggregate_layer_forward(x, neighbors_node, neighbors_relation, weight, bias,
                            ncaps, hidden, *, tm=None, tk=None):
    """x: (n, ncaps, hidden) f32; neighbors_*: (n*m,) int;
       weight: (D, D) torch.nn.Linear layout (out, in); bias: (D,)."""
    n = x.shape[0]
    m = neighbors_node.shape[0] // n
    D = ncaps * hidden

    # Row tile: multiple of 16 (bf16 sublane tiling for the S tile), <= 128.
    TM = tm if tm is not None else min(128, _round_up(n, 16))
    TM = _round_up(TM, 16)
    n_pad = _round_up(n, TM)

    # Reduction (node-table) tiling along NP.
    np_min = _round_up(n + 1, 128)          # include the zero "cache" row
    TK = tk if tk is not None else min(np_min, 512)
    TK = _round_up(TK, 128)
    NP = _round_up(n + 1, TK)

    # ---------------- plain-JAX glue ----------------
    # Padded node-feature table (NP, D); row n (and beyond) is zero.
    x2d = x.reshape(n, D).astype(jnp.float32)
    xpad = jnp.zeros((NP, D), jnp.float32).at[:n].set(x2d)

    # Selection matrices built by scatter-add (no dense one-hots / einsum):
    #   S[c, i, j] = #neighbor slots of node i referencing node j w/ relation c
    # plus the identity term folding in the residual z + x.
    nn_flat = neighbors_node.reshape(-1).astype(jnp.int32)
    nr_flat = neighbors_relation.reshape(-1).astype(jnp.int32)
    rows = jnp.repeat(jnp.arange(n, dtype=jnp.int32), m)
    s = jnp.zeros((ncaps, n_pad, NP), jnp.float32)
    s = s.at[nr_flat, rows, nn_flat].add(1.0)
    ii = jnp.arange(n, dtype=jnp.int32)
    s = s.at[:, ii, ii].add(1.0)
    # Counts + identity are small exact integers -> bf16 is exact and halves
    # the dominant HBM stream (the kernel is memory-bound on S).
    s = s.astype(jnp.bfloat16)

    wT = weight.astype(jnp.float32).T       # (D_in, D_out)
    b2d = bias.reshape(1, D).astype(jnp.float32)

    n_row = n_pad // TM
    n_k = NP // TK

    # VMEM budget: double-buffered pipeline blocks + accumulator scratch.
    need = (2 * (ncaps * TM * TK * 2      # S tile (bf16)
                 + TK * D * 4             # node-table tile
                 + D * D * 4              # weight.T
                 + 8 * 128 * 4            # bias (padded tile)
                 + TM * D * 4)            # output tile
            + TM * D * 4)                 # accumulator scratch
    vmem_limit = min(max(2 * need, 32 * 1024 * 1024), 100 * 1024 * 1024)

    kernel = _make_kernel(ncaps, hidden)
    out = pl.pallas_call(
        kernel,
        out_shape=jax.ShapeDtypeStruct((n_pad, D), jnp.float32),
        grid_spec=pltpu.PrefetchScalarGridSpec(
            num_scalar_prefetch=0,
            grid=(n_row, n_k),
            in_specs=[
                pl.BlockSpec((ncaps, TM, TK), lambda i, k: (0, i, k)),  # S tiles
                pl.BlockSpec((TK, D), lambda i, k: (k, 0)),             # node table tile
                pl.BlockSpec((D, D), lambda i, k: (0, 0)),              # weight.T (resident)
                pl.BlockSpec((1, D), lambda i, k: (0, 0)),              # bias (resident)
            ],
            out_specs=pl.BlockSpec((TM, D), lambda i, k: (i, 0)),
            scratch_shapes=[pltpu.VMEM((TM, D), jnp.float32)],
        ),
        compiler_params=pltpu.CompilerParams(
            dimension_semantics=("parallel", "arbitrary"),
            vmem_limit_bytes=vmem_limit),
    )(s, xpad, wT, b2d)

    return out[:n].reshape(n, ncaps, hidden)


def _reference(x, neighbors_node, neighbors_relation, weight, bias, ncaps, hidden):
    """Pure-JAX reproduction of the PyTorch forward (for verification)."""
    n = x.shape[0]
    m = neighbors_node.shape[0] // n
    z = jnp.concatenate([x, jnp.zeros((1, ncaps, hidden), x.dtype)], axis=0)
    z = z[neighbors_node]                                          # (n*m, ncaps, hidden)
    r = jax.nn.one_hot(neighbors_relation, ncaps, dtype=x.dtype)   # (n*m, ncaps)
    r = r[:, :, None]                                              # (n*m, ncaps, 1)
    z = (z * r).reshape(n, m, ncaps, hidden).sum(axis=1)           # (n, ncaps, hidden)
    h = (z + x).reshape(n, ncaps * hidden)
    h = jnp.maximum(h @ weight.T + bias, 0.0)
    return h.reshape(n, ncaps, hidden)


if __name__ == "__main__":
    # Small, module-consistent shapes.
    n, m = 8, 4
    ncaps, hidden = 4, 32
    D = ncaps * hidden

    key = jax.random.PRNGKey(0)
    kx, knn, knr, kw, kb = jax.random.split(key, 5)

    x = jax.random.normal(kx, (n, ncaps, hidden), dtype=jnp.float32)
    # neighbor indices in [0, n] (index n selects the zero padding row)
    neighbors_node = jax.random.randint(knn, (n * m,), 0, n + 1, dtype=jnp.int32)
    neighbors_relation = jax.random.randint(knr, (n * m,), 0, ncaps, dtype=jnp.int32)

    # Deterministic parameter init (xavier_normal_ for weight: std = sqrt(2/(D+D)))
    w_std = float(np.sqrt(2.0 / (D + D)))
    weight = w_std * jax.random.normal(kw, (D, D), dtype=jnp.float32)   # (out, in)
    b_bound = 1.0 / float(np.sqrt(D))
    bias = jax.random.uniform(kb, (D,), minval=-b_bound, maxval=b_bound,
                              dtype=jnp.float32)

    out = aggregate_layer_forward(x, neighbors_node, neighbors_relation,
                                  weight, bias, ncaps, hidden)
    out = jax.block_until_ready(out)

    ref = _reference(x, neighbors_node, neighbors_relation, weight, bias,
                     ncaps, hidden)
    np.testing.assert_allclose(np.asarray(out), np.asarray(ref),
                               rtol=1e-5, atol=1e-5)

    print("KERNEL_OK")
</pallas_src>

<mosaic_0001>
module attributes {stable_mosaic.version = 11 : i64} {
  func.func @kernel(%arg0: i32, %arg1: i32, %arg2: memref<4x16x128xbf16, #tpu.memory_space<vmem>>, %arg3: memref<128x128xf32, #tpu.memory_space<vmem>>, %arg4: memref<128x128xf32, #tpu.memory_space<vmem>>, %arg5: memref<1x128xf32, #tpu.memory_space<vmem>>, %arg6: memref<16x128xf32, #tpu.memory_space<vmem>>, %arg7: memref<16x128xf32, #tpu.memory_space<vmem>>) attributes {dimension_semantics = [#tpu.dimension_semantics<parallel>, #tpu.dimension_semantics<arbitrary>], iteration_bounds = array<i64: 1, 1>, scalar_prefetch = 0 : i64, scratch_operands = 1 : i64, tpu.core_type = #tpu.core_type<tc>, window_params = [{transform_indices = @transform_0, window_bounds = array<i64: 4, 16, 128>}, {transform_indices = @transform_1, window_bounds = array<i64: 128, 128>}, {pipeline_mode = #tpu.pipeline_mode<synchronous>, transform_indices = @transform_2, window_bounds = array<i64: 128, 128>}, {pipeline_mode = #tpu.pipeline_mode<synchronous>, transform_indices = @transform_3, window_bounds = array<i64: 1, 128>}, {transform_indices = @transform_4, window_bounds = array<i64: 16, 128>}]} {
    %c0_i32 = arith.constant 0 : i32
    %0 = arith.cmpi eq, %arg1, %c0_i32 : i32
    %1 = arith.extui %0 : i1 to i32
    %c0_i32_0 = arith.constant 0 : i32
    %2 = arith.cmpi ne, %1, %c0_i32_0 : i32
    scf.if %2 {
      %cst_23 = arith.constant 0.000000e+00 : f32
      %30 = vector.broadcast %cst_23 : f32 to vector<16x128xf32>
      %c0_24 = arith.constant 0 : index
      %c0_25 = arith.constant 0 : index
      %31 = vector.load %arg7[%c0_24, %c0_25] : memref<16x128xf32, #tpu.memory_space<vmem>>, vector<16x128xf32>
      tpu.vector_store %arg7[%c0_24, %c0_25], %30 {strides = array<i32>} : memref<16x128xf32, #tpu.memory_space<vmem>>, vector<16x128xf32>,
    } else {
    }
    %c0 = arith.constant 0 : index
    %c0_1 = arith.constant 0 : index
    %c0_2 = arith.constant 0 : index
    %3 = vector.load %arg2[%c0, %c0_1, %c0_2] : memref<4x16x128xbf16, #tpu.memory_space<vmem>>, vector<1x16x128xbf16>
    %4 = vector.shape_cast %3 : vector<1x16x128xbf16> to vector<16x128xbf16>
    %5 = arith.extf %4 : vector<16x128xbf16> to vector<16x128xf32>
    %c0_3 = arith.constant 0 : index
    %c0_4 = arith.constant 0 : index
    %6 = vector.load %arg3[%c0_3, %c0_4] : memref<128x128xf32, #tpu.memory_space<vmem>>, vector<128x32xf32>
    %cst = arith.constant dense<0.000000e+00> : vector<16x32xf32>
    %7 = tpu.matmul %5, %6, %cst {dimension_numbers = #tpu.dot_dimension_numbers<[1], [0], [0], [1], [0, 0, 1, 1], [], []>} : vector<16x128xf32>, vector<128x32xf32>, vector<16x32xf32> -> vector<16x32xf32>
    %c1 = arith.constant 1 : index
    %c0_5 = arith.constant 0 : index
    %c0_6 = arith.constant 0 : index
    %8 = vector.load %arg2[%c1, %c0_5, %c0_6] : memref<4x16x128xbf16, #tpu.memory_space<vmem>>, vector<1x16x128xbf16>
    %9 = vector.shape_cast %8 : vector<1x16x128xbf16> to vector<16x128xbf16>
    %10 = arith.extf %9 : vector<16x128xbf16> to vector<16x128xf32>
    %c0_7 = arith.constant 0 : index
    %c32 = arith.constant 32 : index
    %11 = vector.load %arg3[%c0_7, %c32] : memref<128x128xf32, #tpu.memory_space<vmem>>, vector<128x32xf32>
    %cst_8 = arith.constant dense<0.000000e+00> : vector<16x32xf32>
    %12 = tpu.matmul %10, %11, %cst_8 {dimension_numbers = #tpu.dot_dimension_numbers<[1], [0], [0], [1], [0, 0, 1, 1], [], []>} : vector<16x128xf32>, vector<128x32xf32>, vector<16x32xf32> -> vector<16x32xf32>
    %c2 = arith.constant 2 : index
    %c0_9 = arith.constant 0 : index
    %c0_10 = arith.constant 0 : index
    %13 = vector.load %arg2[%c2, %c0_9, %c0_10] : memref<4x16x128xbf16, #tpu.memory_space<vmem>>, vector<1x16x128xbf16>
    %14 = vector.shape_cast %13 : vector<1x16x128xbf16> to vector<16x128xbf16>
    %15 = arith.extf %14 : vector<16x128xbf16> to vector<16x128xf32>
    %c0_11 = arith.constant 0 : index
    %c64 = arith.constant 64 : index
    %16 = vector.load %arg3[%c0_11, %c64] : memref<128x128xf32, #tpu.memory_space<vmem>>, vector<128x32xf32>
    %cst_12 = arith.constant dense<0.000000e+00> : vector<16x32xf32>
    %17 = tpu.matmul %15, %16, %cst_12 {dimension_numbers = #tpu.dot_dimension_numbers<[1], [0], [0], [1], [0, 0, 1, 1], [], []>} : vector<16x128xf32>, vector<128x32xf32>, vector<16x32xf32> -> vector<16x32xf32>
    %c3 = arith.constant 3 : index
    %c0_13 = arith.constant 0 : index
    %c0_14 = arith.constant 0 : index
    %18 = vector.load %arg2[%c3, %c0_13, %c0_14] : memref<4x16x128xbf16, #tpu.memory_space<vmem>>, vector<1x16x128xbf16>
    %19 = vector.shape_cast %18 : vector<1x16x128xbf16> to vector<16x128xbf16>
    %20 = arith.extf %19 : vector<16x128xbf16> to vector<16x128xf32>
    %c0_15 = arith.constant 0 : index
    %c96 = arith.constant 96 : index
    %21 = vector.load %arg3[%c0_15, %c96] : memref<128x128xf32, #tpu.memory_space<vmem>>, vector<128x32xf32>
    %cst_16 = arith.constant dense<0.000000e+00> : vector<16x32xf32>
    %22 = tpu.matmul %20, %21, %cst_16 {dimension_numbers = #tpu.dot_dimension_numbers<[1], [0], [0], [1], [0, 0, 1, 1], [], []>} : vector<16x128xf32>, vector<128x32xf32>, vector<16x32xf32> -> vector<16x32xf32>
    %c0_17 = arith.constant 0 : index
    %c0_18 = arith.constant 0 : index
    %23 = vector.load %arg7[%c0_17, %c0_18] : memref<16x128xf32, #tpu.memory_space<vmem>>, vector<16x128xf32>
    %24 = tpu.concatenate %7, %12, %17, %22 in 1 : vector<16x32xf32>, vector<16x32xf32>, vector<16x32xf32>, vector<16x32xf32> -> vector<16x128xf32>
    %25 = arith.addf %23, %24 : vector<16x128xf32>
    %c0_19 = arith.constant 0 : index
    %c0_20 = arith.constant 0 : index
    %26 = vector.load %arg7[%c0_19, %c0_20] : memref<16x128xf32, #tpu.memory_space<vmem>>, vector<16x128xf32>
    tpu.vector_store %arg7[%c0_19, %c0_20], %25 {strides = array<i32>} : memref<16x128xf32, #tpu.memory_space<vmem>>, vector<16x128xf32>,
    %c0_i32_21 = arith.constant 0 : i32
    %27 = arith.cmpi eq, %arg1, %c0_i32_21 : i32
    %28 = arith.extui %27 : i1 to i32
    %c0_i32_22 = arith.constant 0 : i32
    %29 = arith.cmpi ne, %28, %c0_i32_22 : i32
    scf.if %29 {
      %c0_23 = arith.constant 0 : index
      %c0_24 = arith.constant 0 : index
      %30 = vector.load %arg7[%c0_23, %c0_24] : memref<16x128xf32, #tpu.memory_space<vmem>>, vector<16x128xf32>
      %c0_25 = arith.constant 0 : index
      %c0_26 = arith.constant 0 : index
      %31 = vector.load %arg4[%c0_25, %c0_26] : memref<128x128xf32, #tpu.memory_space<vmem>>, vector<128x128xf32>
      %cst_27 = arith.constant dense<0.000000e+00> : vector<16x128xf32>
      %32 = tpu.matmul %30, %31, %cst_27 {dimension_numbers = #tpu.dot_dimension_numbers<[1], [0], [0], [1], [0, 0, 1, 1], [], []>} : vector<16x128xf32>, vector<128x128xf32>, vector<16x128xf32> -> vector<16x128xf32>
      %c0_28 = arith.constant 0 : index
      %c0_29 = arith.constant 0 : index
      %33 = vector.load %arg5[%c0_28, %c0_29] : memref<1x128xf32, #tpu.memory_space<vmem>>, vector<1x128xf32>
      %34 = vector.broadcast %33 : vector<1x128xf32> to vector<16x128xf32>
      %35 = arith.addf %32, %34 : vector<16x128xf32>
      %cst_30 = arith.constant 0.000000e+00 : f32
      %36 = vector.broadcast %cst_30 : f32 to vector<16x128xf32>
      %37 = arith.maximumf %35, %36 : vector<16x128xf32>
      %c0_31 = arith.constant 0 : index
      %c0_32 = arith.constant 0 : index
      %38 = vector.load %arg6[%c0_31, %c0_32] : memref<16x128xf32, #tpu.memory_space<vmem>>, vector<16x128xf32>
      tpu.vector_store %arg6[%c0_31, %c0_32], %37 {strides = array<i32>} : memref<16x128xf32, #tpu.memory_space<vmem>>, vector<16x128xf32>,
    } else {
    }
    return
  }
  func.func @transform_0(%arg0: i32, %arg1: i32) -> (i32, i32, i32) {
    %c0_i32 = arith.constant 0 : i32
    %c0_i32_0 = arith.constant 0 : i32
    return %c0_i32, %arg0, %arg1 : i32, i32, i32
  }
  func.func @transform_1(%arg0: i32, %arg1: i32) -> (i32, i32) {
    %c0_i32 = arith.constant 0 : i32
    %c0_i32_0 = arith.constant 0 : i32
    return %arg1, %c0_i32 : i32, i32
  }
  func.func @transform_2(%arg0: i32, %arg1: i32) -> (i32, i32) {
    %c0_i32 = arith.constant 0 : i32
    %c0_i32_0 = arith.constant 0 : i32
    %c0_i32_1 = arith.constant 0 : i32
    return %c0_i32, %c0_i32_0 : i32, i32
  }
  func.func @transform_3(%arg0: i32, %arg1: i32) -> (i32, i32) {
    %c0_i32 = arith.constant 0 : i32
    %c0_i32_0 = arith.constant 0 : i32
    %c0_i32_1 = arith.constant 0 : i32
    return %c0_i32, %c0_i32_0 : i32, i32
  }
  func.func @transform_4(%arg0: i32, %arg1: i32) -> (i32, i32) {
    %c0_i32 = arith.constant 0 : i32
    %c0_i32_0 = arith.constant 0 : i32
    return %arg0, %c0_i32 : i32, i32
  }
}

</mosaic_0001>

<bundles_post_ra>
// kernel: tpu_custom_call.1
= control target key start
LH: loop header
LB: loop body
LE: loop exit
PB: predicated region body
PF: predicated region fallthrough
CT: control target
= control target key end

     0   :  { %9 = vsyncpa [#allocation4], 0  ;;  %s1311_s0 = inlined_call_operand.hbm [shape: bf16[4,16,128], index: 0, kind: input, shape index: {}]   ;;  %s1312_s1 = inlined_call_operand.hbm [shape: f32[128,128], index: 1, kind: input, shape index: {}]   ;;  %s1313_s2 = inlined_call_operand.hbm [shape: f32[128,128], index: 2, kind: input, shape index: {}]   ;;  %s1314_s3 = inlined_call_operand.vmem [shape: f32[1,128], index: 3, kind: input, shape index: {}]   ;;  %s1315_s4 = inlined_call_operand.hbm [shape: f32[16,128], index: 4, kind: output, shape index: {}]  }
   0x1   :  { %10 = vsyncpa [#allocation7], 0 }
   0x2   :  { %11 = vsyncpa [#allocation5], 0  ;;  %s1117_s15 = smov [#allocation6]  }
   0x3   :  { %s29_s16 = sshll.u32 %s1117_s15, 4  ;;  %s30_s16 = int_to_ptr.vmem [resolvable:$true] %s29_s16 }
   0x4   :  { %s1039_s17 = scalar_lea.vmem %s30_s16, 2048  ;;  %p1044_p1 = scmp.lt.s32.totalorder %s30_s16, %s30_s16 }
   0x5   :  { %p1040_p0 = scmp.ne.s32.totalorder %s30_s16, %s1039_s17  ;;  %p1045_p2 = scmp.lt.s32.totalorder %s1039_s17, %s1039_s17 }
   0x7   :  { %p1046_p3 = por %p1045_p2, %p1044_p1 }
   0x9   :  { %p1047_p4 = pnand %p1046_p3, %p1040_p0 }
   0xb   :  { %1050 = shalt.err (!%p1047_p4)
}
   0xc   :  { %s1118_s18 = smov 128   ;;  %s1119_s19 = smov 8  }
   0xd   :  { %35 = dma.hbm_to_vmem [thread:$0]  %s1312_s1, 2048, %s30_s16, [#allocation7], %s1118_s18, %s1118_s18, %s1119_s19  }
   0xe   :  { %s1120_s22 = smov [#allocation3]  }
   0xf   :  { %s17_s23 = sshll.u32 %s1120_s22, 4  ;;  %s18_s23 = int_to_ptr.vmem [resolvable:$true] %s17_s23 }
  0x10   :  { %s1059_s24 = scalar_lea.vmem %s18_s23, 512  ;;  %p1064_p6 = scmp.lt.s32.totalorder %s18_s23, %s18_s23 }
  0x11   :  { %p1060_p5 = scmp.ne.s32.totalorder %s18_s23, %s1059_s24  ;;  %p1065_p7 = scmp.lt.s32.totalorder %s1059_s24, %s1059_s24 }
  0x13   :  { %p1066_p8 = por %p1065_p7, %p1064_p6 }
  0x15   :  { %p1067_p9 = pnand %p1066_p8, %p1060_p5 }
  0x17   :  { %1070 = shalt.err (!%p1067_p9)
}
  0x18   :  { %s1121_s25 = smov 64   ;;  %s1122_s26 = smov 4  }
  0x19   :  { %23 = dma.hbm_to_vmem [thread:$0]  %s1311_s0, 512, %s18_s23, [#allocation4], %s1121_s25, %s1121_s25, %s1122_s26  }
  0x1a   :  { %s1123_s29 = smov [#allocation8]  }
  0x1b   :  { %s41_s1 = sshll.u32 %s1123_s29, 4  ;;  %s42_s1 = int_to_ptr.vmem [resolvable:$true] %s41_s1 }
  0x1c   :  { %s1079_s30 = scalar_lea.vmem %s42_s1, 2048  ;;  %p1084_p11 = scmp.lt.s32.totalorder %s42_s1, %s42_s1 }
  0x1d   :  { %p1080_p10 = scmp.ne.s32.totalorder %s42_s1, %s1079_s30  ;;  %p1085_p12 = scmp.lt.s32.totalorder %s1079_s30, %s1079_s30 }
  0x1f   :  { %p1086_p13 = por %p1085_p12, %p1084_p11 }
  0x21   :  { %p1087_p0 = pnand %p1086_p13, %p1080_p10 }
  0x23   :  { %1090 = shalt.err (!%p1087_p0)
}
  0x24   :  { %47 = dma.hbm_to_vmem [thread:$0]  %s1313_s2, 2048, %s42_s1, [#allocation7], %s1118_s18, %s1118_s18, %s1119_s19  }
  0x25   :  { %1111 = dma.done.wait [#allocation4], 512  }
  0x26   :  { %1112 = vsyncadd [#allocation4], 4294966784 }
  0x27   :  { %1113 = dma.done.wait [#allocation7], 4096  }
  0x28   :  { %1114 = vsyncadd [#allocation7], 4294963200  ;;  %v1169_v0 = vld [vmem:[#allocation6 + $0x78] sm:$0xff]  ;;  %v1171_v1 = vld [vmem:[#allocation6 + $0x68] sm:$0xff]  ;;  %s1124_s0 = smov 96   ;;  %s1125_s2 = smov 32  }
  0x29   :  { %211 = vrot.lane.b32.xlu0 %v1169_v0, %s1124_s0  ;;  %207 = vrot.lane.b32.xlu1 %v1171_v1, %s1124_s0  ;;  %v1177_v2 = vld [vmem:[#allocation6 + $0x70] sm:$0xff]  ;;  %v1179_v3 = vld [vmem:[#allocation6 + $0x60] sm:$0xff]  ;;  %v1188_v4 = vld [vmem:[#allocation6 + $0x58] sm:$0xff]  ;;  %vm586_vm0 = vcmask 261120   ;;  %vm589_vm1 = vcmask 523264   ;;  %vm592_vm2 = vcmask 785408  }
  0x2a   :  { %831 = vmatprep.subr.mxu0 %v1169_v0  ;;  %v1190_v5 = vld [vmem:[#allocation6 + $0x50] sm:$0xff]  ;;  %v1199_v6 = vld [vmem:[#allocation6 + $0x48] sm:$0xff]  ;;  %v1201_v7 = vld [vmem:[#allocation6 + $0x40] sm:$0xff]  ;;  %s1126_s9 = smov [#allocation9]  }
  0x2b   :  { %832 = vmatpush3.msra.mxu0 %v1169_v0  ;;  %v1210_v8 = vld [vmem:[#allocation6 + $0x38] sm:$0xff]  ;;  %v1212_v9 = vld [vmem:[#allocation6 + $0x30] sm:$0xff]  ;;  %v726_v10 = vld [vmem:[#allocation3] sm:$0xff]   ;;  %s711_s10 = sshll.u32 %s1126_s9, 4  ;;  %s712_s10 = int_to_ptr.vmem [resolvable:$true] %s711_s10 }
  0x2c   :  { %833 = vmatprep.subr.mxu0 %v1177_v2  ;;  %v74_v11 = vld [vmem:[#allocation6 + $0x28] sm:$0xff]  ;;  %v73_v12 = vld [vmem:[#allocation6 + $0x20] sm:$0xff]  ;;  %v727_v13 = vunpack.c.l.bf16 %v726_v10  ;;  %v72_v16 = vld [vmem:[#allocation6 + $0x18] sm:$0xff]  ;;  %v728_v20 = vunpack.c.h.bf16 %v726_v10  ;;  %s1091_s11 = scalar_lea.vmem %s712_s10, 256  ;;  %p1096_p2 = scmp.lt.s32.totalorder %s712_s10, %s712_s10 }
  0x2d   :  { %209 = vrot.lane.b32.xlu0 %v1177_v2, %s1124_s0  ;;  %205 = vrot.lane.b32.xlu1 %v1179_v3, %s1124_s0  ;;  %v1222_v14 = vld [vmem:[#allocation3 + $0x8] sm:$0xff]   ;;  %v71_v17 = vld [vmem:[#allocation6 + $0x10] sm:$0xff]  ;;  %v69_v19 = vld [vmem:[#allocation6] sm:$0xff]  ;;  %p1092_p1 = scmp.ne.s32.totalorder %s712_s10, %s1091_s11  ;;  %p1097_p3 = scmp.lt.s32.totalorder %s1091_s11, %s1091_s11 }
  0x2e   :  { %834 = vmatpush3.msra.mxu0 %v1177_v2  ;;  %v731_v15 = vunpack.c.l.bf16 %v1222_v14  ;;  %863 = vmatprep.mubr.f32.mxu0 %v727_v13  ;;  %v70_v18 = vld [vmem:[#allocation6 + $0x8] sm:$0xff]  ;;  %v1282_v21 = vld [vmem:[#allocation3 + $0x10] sm:$0xff]   ;;  %v1293_v39 = vld [vmem:[#allocation3 + $0x18] sm:$0xff]   ;;  %v732_v40 = vunpack.c.h.bf16 %v1222_v14 }
  0x2f   :  { %835 = vmatprep.subr.mxu0 %v1171_v1  ;;  %v735_v22 = vunpack.c.l.bf16 %v1282_v21  ;;  %v739_v43 = vunpack.c.l.bf16 %v1293_v39  ;;  %v618_v13 = vld [vmem:[#allocation8 + $0x70] sm:$0xff]  ;;  %v617_v14 = vld [vmem:[#allocation8 + $0x68] sm:$0xff]  ;;  %p1098_p4 = por %p1097_p3, %p1096_p2 }
  0x30   :  { %836 = vmatpush3.msra.mxu0 %v1171_v1  ;;  %898 = vmatprep.mubr.f32.mxu1 %v731_v15  ;;  %v616_v15 = vld [vmem:[#allocation8 + $0x60] sm:$0xff] }
  0x31   :  { %203 = vrot.lane.b32.xlu0 %v1188_v4, %s1124_s0  ;;  %201 = vrot.lane.b32.xlu1 %v1190_v5, %s1124_s0  ;;  %p1099_p5 = pnand %p1098_p4, %p1092_p1 }
  0x32   :  { %837 = vmatprep.subr.mxu0 %v1179_v3 }
  0x33   :  { %838 = vmatpush3.msra.mxu0 %v1179_v3 }
  0x34   :  { %839 = vmatprep.subr.mxu0 %v1188_v4 }
  0x35   :  { %199 = vrot.lane.b32.xlu0 %v1199_v6, %s1124_s0  ;;  %197 = vrot.lane.b32.xlu1 %v1201_v7, %s1124_s0 }
  0x36   :  { %840 = vmatpush3.msra.mxu0 %v1188_v4 }
  0x37   :  { %841 = vmatprep.subr.mxu0 %v1190_v5 }
  0x38   :  { %842 = vmatpush3.msra.mxu0 %v1190_v5 }
  0x39   :  { %195 = vrot.lane.b32.xlu0 %v1210_v8, %s1124_s0  ;;  %193 = vrot.lane.b32.xlu1 %v1212_v9, %s1124_s0 }
  0x3a   :  { %843 = vmatprep.subr.mxu0 %v1199_v6 }
  0x3b   :  { %844 = vmatpush3.msra.mxu0 %v1199_v6 }
  0x3c   :  { %845 = vmatprep.subr.mxu0 %v1201_v7 }
  0x3d   :  { %191 = vrot.lane.b32.xlu0 %v74_v11, %s1124_s0  ;;  %189 = vrot.lane.b32.xlu1 %v73_v12, %s1124_s0 }
  0x3e   :  { %846 = vmatpush3.msra.mxu0 %v1201_v7 }
  0x3f   :  { %847 = vmatprep.subr.mxu0 %v1210_v8 }
  0x40   :  { %848 = vmatpush3.msra.mxu0 %v1210_v8 }
  0x41   :  { %187 = vrot.lane.b32.xlu0 %v72_v16, %s1124_s0  ;;  %185 = vrot.lane.b32.xlu1 %v71_v17, %s1124_s0 }
  0x42   :  { %849 = vmatprep.subr.mxu0 %v1212_v9 }
  0x43   :  { %850 = vmatpush3.msra.mxu0 %v1212_v9 }
  0x44   :  { %851 = vmatprep.subr.mxu0 %v74_v11 }
  0x45   :  { %183 = vrot.lane.b32.xlu0 %v70_v18, %s1124_s0  ;;  %181 = vrot.lane.b32.xlu1 %v69_v19, %s1124_s0 }
  0x46   :  { %852 = vmatpush3.msra.mxu0 %v74_v11 }
  0x47   :  { %853 = vmatprep.subr.mxu0 %v73_v12 }
  0x48   :  { %854 = vmatpush3.msra.mxu0 %v73_v12 }
  0x49   :  { %339 = vrot.lane.b32.xlu0 %v1169_v0, %s1121_s25  ;;  %467 = vrot.lane.b32.xlu1 %v1169_v0, %s1125_s2 }
  0x4a   :  { %855 = vmatprep.subr.mxu0 %v72_v16 }
  0x4b   :  { %856 = vmatpush3.msra.mxu0 %v72_v16 }
  0x4c   :  { %857 = vmatprep.subr.mxu0 %v71_v17 }
  0x4d   :  { %337 = vrot.lane.b32.xlu0 %v1177_v2, %s1121_s25  ;;  %465 = vrot.lane.b32.xlu1 %v1177_v2, %s1125_s2 }
  0x4e   :  { %858 = vmatpush3.msra.mxu0 %v71_v17 }
  0x4f   :  { %859 = vmatprep.subr.mxu0 %v70_v18 }
  0x50   :  { %860 = vmatpush3.msra.mxu0 %v70_v18 }
  0x51   :  { %335 = vrot.lane.b32.xlu0 %v1171_v1, %s1121_s25  ;;  %463 = vrot.lane.b32.xlu1 %v1171_v1, %s1125_s2 }
  0x52   :  { %861 = vmatprep.subr.mxu0 %v69_v19 }
  0x53   :  { %862 = vmatpush3.msra.mxu0 %v69_v19 }
  0x54   :  { %864 = vmatmul.mubr.f32.vlgmr.msra.gmra.mxu0 %v728_v20 }
  0x55   :  { %333 = vrot.lane.b32.xlu0 %v1179_v3, %s1121_s25  ;;  %461 = vrot.lane.b32.xlu1 %v1179_v3, %s1125_s2 }
  0x56   :  { %933 = vmatprep.mubr.f32.mxu0 %v735_v22  ;;  %v612_v22 = vld [vmem:[#allocation8 + $0x40] sm:$0xff] }
  0x59   :  { %331 = vrot.lane.b32.xlu0 %v1188_v4, %s1121_s25  ;;  %459 = vrot.lane.b32.xlu1 %v1188_v4, %s1125_s2 }
  0x5d   :  { %329 = vrot.lane.b32.xlu0 %v1190_v5, %s1121_s25  ;;  %457 = vrot.lane.b32.xlu1 %v1190_v5, %s1125_s2 }
  0x61   :  { %327 = vrot.lane.b32.xlu0 %v1199_v6, %s1121_s25  ;;  %455 = vrot.lane.b32.xlu1 %v1199_v6, %s1125_s2 }
  0x65   :  { %325 = vrot.lane.b32.xlu0 %v1201_v7, %s1121_s25  ;;  %453 = vrot.lane.b32.xlu1 %v1201_v7, %s1125_s2 }
  0x69   :  { %323 = vrot.lane.b32.xlu0 %v1210_v8, %s1121_s25  ;;  %451 = vrot.lane.b32.xlu1 %v1210_v8, %s1125_s2  ;;  %v736_v8 = vunpack.c.h.bf16 %v1282_v21  ;;  %v613_v21 = vld [vmem:[#allocation8 + $0x48] sm:$0xff] }
  0x6d   :  { %321 = vrot.lane.b32.xlu0 %v1212_v9, %s1121_s25  ;;  %449 = vrot.lane.b32.xlu1 %v1212_v9, %s1125_s2  ;;  %v740_v9 = vunpack.c.h.bf16 %v1293_v39 }
  0x71   :  { %319 = vrot.lane.b32.xlu0 %v74_v11, %s1121_s25  ;;  %447 = vrot.lane.b32.xlu1 %v74_v11, %s1125_s2 }
  0x75   :  { %317 = vrot.lane.b32.xlu0 %v73_v12, %s1121_s25  ;;  %445 = vrot.lane.b32.xlu1 %v73_v12, %s1125_s2  ;;  %v619_v12 = vld [vmem:[#allocation8 + $0x78] sm:$0xff] }
  0x79   :  { %315 = vrot.lane.b32.xlu0 %v72_v16, %s1121_s25  ;;  %443 = vrot.lane.b32.xlu1 %v72_v16, %s1125_s2 }
  0x7d   :  { %313 = vrot.lane.b32.xlu0 %v71_v17, %s1121_s25  ;;  %441 = vrot.lane.b32.xlu1 %v71_v17, %s1125_s2  ;;  %v615_v17 = vld [vmem:[#allocation8 + $0x58] sm:$0xff] }
  0x81   :  { %311 = vrot.lane.b32.xlu0 %v70_v18, %s1121_s25  ;;  %439 = vrot.lane.b32.xlu1 %v70_v18, %s1125_s2 }
  0x85   :  { %309 = vrot.lane.b32.xlu0 %v69_v19, %s1121_s25  ;;  %437 = vrot.lane.b32.xlu1 %v69_v19, %s1125_s2  ;;  %v614_v19 = vld [vmem:[#allocation8 + $0x50] sm:$0xff] }
  0x9b   :  { %v212_v23 = vpop.permute.xlu0 %211  ;;  %v208_v24 = vpop.permute.xlu1 %207 }
  0x9c   :  { %866 = vmatprep.subr.mxu1 %v212_v23 }
  0x9d   :  { %867 = vmatpush3.msra.mxu1 %v212_v23  ;;  %v611_v23 = vld [vmem:[#allocation8 + $0x38] sm:$0xff] }
  0x9f   :  { %v210_v25 = vpop.permute.xlu0 %209  ;;  %v206_v26 = vpop.permute.xlu1 %205 }
  0xa0   :  { %868 = vmatprep.subr.mxu1 %v210_v25 }
  0xa1   :  { %869 = vmatpush3.msra.mxu1 %v210_v25  ;;  %v609_v25 = vld [vmem:[#allocation8 + $0x28] sm:$0xff] }
  0xa2   :  { %870 = vmatprep.subr.mxu1 %v208_v24 }
  0xa3   :  { %871 = vmatpush3.msra.mxu1 %v208_v24  ;;  %v204_v27 = vpop.permute.xlu0 %203  ;;  %v202_v28 = vpop.permute.xlu1 %201  ;;  %v610_v24 = vld [vmem:[#allocation8 + $0x30] sm:$0xff] }
  0xa4   :  { %872 = vmatprep.subr.mxu1 %v206_v26 }
  0xa5   :  { %873 = vmatpush3.msra.mxu1 %v206_v26  ;;  %v608_v26 = vld [vmem:[#allocation8 + $0x20] sm:$0xff] }
  0xa6   :  { %874 = vmatprep.subr.mxu1 %v204_v27 }
  0xa7   :  { %875 = vmatpush3.msra.mxu1 %v204_v27  ;;  %v200_v29 = vpop.permute.xlu0 %199  ;;  %v198_v30 = vpop.permute.xlu1 %197  ;;  %v607_v27 = vld [vmem:[#allocation8 + $0x18] sm:$0xff] }
  0xa8   :  { %876 = vmatprep.subr.mxu1 %v202_v28 }
  0xa9   :  { %877 = vmatpush3.msra.mxu1 %v202_v28  ;;  %v606_v28 = vld [vmem:[#allocation8 + $0x10] sm:$0xff] }
  0xaa   :  { %878 = vmatprep.subr.mxu1 %v200_v29 }
  0xab   :  { %879 = vmatpush3.msra.mxu1 %v200_v29  ;;  %v196_v31 = vpop.permute.xlu0 %195  ;;  %v194_v32 = vpop.permute.xlu1 %193  ;;  %v605_v29 = vld [vmem:[#allocation8 + $0x8] sm:$0xff] }
  0xac   :  { %880 = vmatprep.subr.mxu1 %v198_v30 }
  0xad   :  { %881 = vmatpush3.msra.mxu1 %v198_v30 }
  0xae   :  { %882 = vmatprep.subr.mxu1 %v196_v31 }
  0xaf   :  { %883 = vmatpush3.msra.mxu1 %v196_v31  ;;  %v192_v33 = vpop.permute.xlu0 %191  ;;  %v190_v34 = vpop.permute.xlu1 %189  ;;  %v604_v31 = vld [vmem:[#allocation8] sm:$0xff] }
  0xb0   :  { %884 = vmatprep.subr.mxu1 %v194_v32 }
  0xb1   :  { %885 = vmatpush3.msra.mxu1 %v194_v32 }
  0xb2   :  { %886 = vmatprep.subr.mxu1 %v192_v33 }
  0xb3   :  { %887 = vmatpush3.msra.mxu1 %v192_v33  ;;  %v188_v35 = vpop.permute.xlu0 %187  ;;  %v186_v36 = vpop.permute.xlu1 %185 }
  0xb4   :  { %888 = vmatprep.subr.mxu1 %v190_v34 }
  0xb5   :  { %889 = vmatpush3.msra.mxu1 %v190_v34 }
  0xb6   :  { %890 = vmatprep.subr.mxu1 %v188_v35 }
  0xb7   :  { %891 = vmatpush3.msra.mxu1 %v188_v35  ;;  %v184_v37 = vpop.permute.xlu0 %183  ;;  %v182_v38 = vpop.permute.xlu1 %181 }
  0xb8   :  { %892 = vmatprep.subr.mxu1 %v186_v36 }
  0xb9   :  { %893 = vmatpush3.msra.mxu1 %v186_v36 }
  0xba   :  { %894 = vmatprep.subr.mxu1 %v184_v37 }
  0xbb   :  { %895 = vmatpush3.msra.mxu1 %v184_v37  ;;  %v340_v41 = vpop.permute.xlu0 %339  ;;  %v468_v42 = vpop.permute.xlu1 %467 }
  0xbc   :  { %896 = vmatprep.subr.mxu1 %v182_v38  ;;  %901 = vmatprep.subr.mxu0 %v340_v41 }
  0xbd   :  { %897 = vmatpush3.msra.mxu1 %v182_v38  ;;  %902 = vmatpush3.msra.mxu0 %v340_v41 }
  0xbe   :  { %899 = vmatmul.mubr.f32.vlgmr.msra.gmra.mxu1 %v732_v40  ;;  %936 = vmatprep.subr.mxu1 %v468_v42 }
  0xbf   :  { %v338_v44 = vpop.permute.xlu0 %337  ;;  %937 = vmatpush3.msra.mxu1 %v468_v42  ;;  %v466_v45 = vpop.permute.xlu1 %465  ;;  %968 = vmatprep.mubr.f32.mxu1 %v739_v43 }
  0xc0   :  { %903 = vmatprep.subr.mxu0 %v338_v44  ;;  %938 = vmatprep.subr.mxu1 %v466_v45 }
  0xc1   :  { %904 = vmatpush3.msra.mxu0 %v338_v44  ;;  %939 = vmatpush3.msra.mxu1 %v466_v45 }
  0xc3   :  { %v336_v46 = vpop.permute.xlu0 %335  ;;  %v464_v47 = vpop.permute.xlu1 %463 }
  0xc4   :  { %905 = vmatprep.subr.mxu0 %v336_v46  ;;  %940 = vmatprep.subr.mxu1 %v464_v47 }
  0xc5   :  { %906 = vmatpush3.msra.mxu0 %v336_v46  ;;  %941 = vmatpush3.msra.mxu1 %v464_v47 }
  0xc7   :  { %v334_v48 = vpop.permute.xlu0 %333  ;;  %v462_v49 = vpop.permute.xlu1 %461 }
  0xc8   :  { %907 = vmatprep.subr.mxu0 %v334_v48  ;;  %942 = vmatprep.subr.mxu1 %v462_v49 }
  0xc9   :  { %908 = vmatpush3.msra.mxu0 %v334_v48  ;;  %943 = vmatpush3.msra.mxu1 %v462_v49 }
  0xcb   :  { %v332_v50 = vpop.permute.xlu0 %331  ;;  %v460_v51 = vpop.permute.xlu1 %459 }
  0xcc   :  { %909 = vmatprep.subr.mxu0 %v332_v50  ;;  %944 = vmatprep.subr.mxu1 %v460_v51 }
  0xcd   :  { %910 = vmatpush3.msra.mxu0 %v332_v50  ;;  %945 = vmatpush3.msra.mxu1 %v460_v51 }
  0xcf   :  { %v330_v52 = vpop.permute.xlu0 %329  ;;  %v458_v53 = vpop.permute.xlu1 %457 }
  0xd0   :  { %911 = vmatprep.subr.mxu0 %v330_v52  ;;  %946 = vmatprep.subr.mxu1 %v458_v53 }
  0xd1   :  { %912 = vmatpush3.msra.mxu0 %v330_v52  ;;  %947 = vmatpush3.msra.mxu1 %v458_v53 }
  0xd3   :  { %v328_v54 = vpop.permute.xlu0 %327  ;;  %v456_v55 = vpop.permute.xlu1 %455 }
  0xd4   :  { %913 = vmatprep.subr.mxu0 %v328_v54  ;;  %948 = vmatprep.subr.mxu1 %v456_v55 }
  0xd5   :  { %914 = vmatpush3.msra.mxu0 %v328_v54  ;;  %949 = vmatpush3.msra.mxu1 %v456_v55  ;;  %v724_v54 = vld [vmem:[%s1314_s3] ss:$0 sm:$0xff] }
  0xd7   :  { %v326_v56 = vpop.permute.xlu0 %325  ;;  %v454_v57 = vpop.permute.xlu1 %453 }
  0xd8   :  { %915 = vmatprep.subr.mxu0 %v326_v56  ;;  %950 = vmatprep.subr.mxu1 %v454_v57 }
  0xd9   :  { %916 = vmatpush3.msra.mxu0 %v326_v56  ;;  %951 = vmatpush3.msra.mxu1 %v454_v57 }
  0xdb   :  { %v324_v58 = vpop.permute.xlu0 %323  ;;  %v452_v59 = vpop.permute.xlu1 %451 }
  0xdc   :  { %917 = vmatprep.subr.mxu0 %v324_v58  ;;  %952 = vmatprep.subr.mxu1 %v452_v59 }
  0xdd   :  { %918 = vmatpush3.msra.mxu0 %v324_v58  ;;  %953 = vmatpush3.msra.mxu1 %v452_v59 }
  0xdf   :  { %v322_v60 = vpop.permute.xlu0 %321  ;;  %v450_v61 = vpop.permute.xlu1 %449 }
  0xe0   :  { %919 = vmatprep.subr.mxu0 %v322_v60  ;;  %954 = vmatprep.subr.mxu1 %v450_v61 }
  0xe1   :  { %920 = vmatpush3.msra.mxu0 %v322_v60  ;;  %955 = vmatpush3.msra.mxu1 %v450_v61 }
  0xe3   :  { %v320_v62 = vpop.permute.xlu0 %319  ;;  %v448_v63 = vpop.permute.xlu1 %447 }
  0xe4   :  { %921 = vmatprep.subr.mxu0 %v320_v62  ;;  %956 = vmatprep.subr.mxu1 %v448_v63 }
  0xe5   :  { %922 = vmatpush3.msra.mxu0 %v320_v62  ;;  %957 = vmatpush3.msra.mxu1 %v448_v63 }
  0xe7   :  { %v318_v0 = vpop.permute.xlu0 %317  ;;  %v446_v1 = vpop.permute.xlu1 %445 }
  0xe8   :  { %923 = vmatprep.subr.mxu0 %v318_v0  ;;  %958 = vmatprep.subr.mxu1 %v446_v1 }
  0xe9   :  { %924 = vmatpush3.msra.mxu0 %v318_v0  ;;  %959 = vmatpush3.msra.mxu1 %v446_v1 }
  0xeb   :  { %v316_v2 = vpop.permute.xlu0 %315  ;;  %v444_v3 = vpop.permute.xlu1 %443 }
  0xec   :  { %925 = vmatprep.subr.mxu0 %v316_v2  ;;  %960 = vmatprep.subr.mxu1 %v444_v3 }
  0xed   :  { %926 = vmatpush3.msra.mxu0 %v316_v2  ;;  %961 = vmatpush3.msra.mxu1 %v444_v3 }
  0xef   :  { %v314_v4 = vpop.permute.xlu0 %313  ;;  %v442_v5 = vpop.permute.xlu1 %441 }
  0xf0   :  { %927 = vmatprep.subr.mxu0 %v314_v4  ;;  %962 = vmatprep.subr.mxu1 %v442_v5 }
  0xf1   :  { %928 = vmatpush3.msra.mxu0 %v314_v4  ;;  %963 = vmatpush3.msra.mxu1 %v442_v5 }
  0xf3   :  { %v312_v6 = vpop.permute.xlu0 %311  ;;  %v440_v7 = vpop.permute.xlu1 %439 }
  0xf4   :  { %929 = vmatprep.subr.mxu0 %v312_v6  ;;  %964 = vmatprep.subr.mxu1 %v440_v7 }
  0xf5   :  { %930 = vmatpush3.msra.mxu0 %v312_v6  ;;  %965 = vmatpush3.msra.mxu1 %v440_v7 }
  0xf7   :  { %v310_v10 = vpop.permute.xlu0 %309  ;;  %v438_v11 = vpop.permute.xlu1 %437 }
  0xf8   :  { %931 = vmatprep.subr.mxu0 %v310_v10  ;;  %966 = vmatprep.subr.mxu1 %v438_v11 }
  0xf9   :  { %932 = vmatpush3.msra.mxu0 %v310_v10  ;;  %967 = vmatpush3.msra.mxu1 %v438_v11 }
  0xfa   :  { %934 = vmatmul.mubr.f32.vlgmr.msra.gmra.mxu0 %v736_v8  ;;  %969 = vmatmul.mubr.f32.vlgmr.msra.gmra.mxu1 %v740_v9 }
  0xfb   :  { %971 = vmatprep.subr.mxu0 %v619_v12 }
  0xfc   :  { %972 = vmatpush3.msra.mxu0 %v619_v12 }
  0xfd   :  { %973 = vmatprep.subr.mxu0 %v618_v13 }
  0xfe   :  { %974 = vmatpush3.msra.mxu0 %v618_v13 }
  0xff   :  { %975 = vmatprep.subr.mxu0 %v617_v14 }
 0x100   :  { %976 = vmatpush3.msra.mxu0 %v617_v14 }
 0x101   :  { %977 = vmatprep.subr.mxu0 %v616_v15 }
 0x102   :  { %978 = vmatpush3.msra.mxu0 %v616_v15 }
 0x103   :  { %979 = vmatprep.subr.mxu0 %v615_v17 }
 0x104   :  { %980 = vmatpush3.msra.mxu0 %v615_v17 }
 0x105   :  { %981 = vmatprep.subr.mxu0 %v614_v19 }
 0x106   :  { %982 = vmatpush3.msra.mxu0 %v614_v19 }
 0x107   :  { %983 = vmatprep.subr.mxu0 %v613_v21 }
 0x108   :  { %984 = vmatpush3.msra.mxu0 %v613_v21 }
 0x109   :  { %985 = vmatprep.subr.mxu0 %v612_v22 }
 0x10a   :  { %986 = vmatpush3.msra.mxu0 %v612_v22 }
 0x10b   :  { %987 = vmatprep.subr.mxu0 %v611_v23 }
 0x10c   :  { %988 = vmatpush3.msra.mxu0 %v611_v23 }
 0x10d   :  { %989 = vmatprep.subr.mxu0 %v610_v24 }
 0x10e   :  { %990 = vmatpush3.msra.mxu0 %v610_v24 }
 0x10f   :  { %991 = vmatprep.subr.mxu0 %v609_v25 }
 0x110   :  { %992 = vmatpush3.msra.mxu0 %v609_v25 }
 0x111   :  { %993 = vmatprep.subr.mxu0 %v608_v26 }
 0x112   :  { %994 = vmatpush3.msra.mxu0 %v608_v26 }
 0x113   :  { %995 = vmatprep.subr.mxu0 %v607_v27 }
 0x114   :  { %996 = vmatpush3.msra.mxu0 %v607_v27  ;;  %v865_v30 = vpop.f32.mrf.mxu0 }
 0x115   :  { %997 = vmatprep.subr.mxu0 %v606_v28 }
 0x116   :  { %998 = vmatpush3.msra.mxu0 %v606_v28  ;;  %v151_v32 = vpop.f32.mrf.mxu0 }
 0x117   :  { %999 = vmatprep.subr.mxu0 %v605_v29 }
 0x118   :  { %1000 = vmatpush3.msra.mxu0 %v605_v29 }
 0x119   :  { %1001 = vmatprep.subr.mxu0 %v604_v31 }
 0x11a   :  { %1002 = vmatpush3.msra.mxu0 %v604_v31 }
 0x17e   :  { %v900_v16 = vpop.f32.mrf.mxu1 }
 0x180   :  { %v295_v18 = vpop.f32.mrf.mxu1 }
 0x181   :  { %v1016_v20 = vpack.i.bf16 %v900_v16, %v295_v18 }
 0x183   :  { %1017 = vrot.lane.b32.xlu0 %v1016_v20, %s1125_s2 }
 0x1ba   :  { %v935_v33 = vpop.f32.mrf.mxu0  ;;  %v970_v34 = vpop.f32.mrf.mxu1 }
 0x1bc   :  { %v423_v35 = vpop.f32.mrf.mxu0  ;;  %v551_v36 = vpop.f32.mrf.mxu1 }
 0x1bd   :  { %v1021_v37 = vpack.i.bf16 %v935_v33, %v423_v35  ;;  %v1026_v38 = vpack.i.bf16 %v970_v34, %v551_v36 }
 0x1bf   :  { %1027 = vrot.lane.b32.xlu0 %v1026_v38, %s1124_s0  ;;  %1022 = vrot.lane.b32.xlu1 %v1021_v37, %s1121_s25 }
 0x1f5   :  { %v1018_v39 = vpop.permute.xlu0 %1017 }
 0x1f6   :  { %v1020_v40 = vunpack.i.h.bf16 %v1018_v39  ;;  %v1019_v41 = vunpack.i.l.bf16 %v1018_v39 }
 0x1f8   :  { %v588_v48 = vsel %vm586_vm0, %v865_v30, %v1020_v40  ;;  %v587_v49 = vsel %vm586_vm0, %v151_v32, %v1019_v41 }
 0x231   :  { %v1028_v42 = vpop.permute.xlu0 %1027  ;;  %v1023_v43 = vpop.permute.xlu1 %1022 }
 0x232   :  { %v1030_v44 = vunpack.i.h.bf16 %v1028_v42  ;;  %v1029_v45 = vunpack.i.l.bf16 %v1028_v42  ;;  %v1025_v46 = vunpack.i.h.bf16 %v1023_v43  ;;  %v1024_v47 = vunpack.i.l.bf16 %v1023_v43 }
 0x234   :  { %v591_v50 = vsel %vm589_vm1, %v588_v48, %v1025_v46  ;;  %v590_v51 = vsel %vm589_vm1, %v587_v49, %v1024_v47 }
 0x235   :  { %v593_v52 = vsel %vm592_vm2, %v590_v51, %v1029_v45  ;;  %v594_v53 = vsel %vm592_vm2, %v591_v50, %v1030_v44 }
 0x236   :  { %1003 = vmatprep.mubr.f32.mxu0 %v593_v52 }
 0x237   :  { %1004 = vmatmul.mubr.f32.vlgmr.msra.gmra.mxu0 %v594_v53 }
 0x2f7   :  { %v1005_v55 = vpop.f32.mrf.mxu0 }
 0x2f8   :  { %v699_v56 = vadd.f32 %v1005_v55, %v724_v54 }
 0x2f9   :  { %v693_v57 = vpop.f32.mrf.mxu0 }
 0x2fa   :  { %v703_v58 = vmax.f32 %v699_v56, 0.0  ;;  %v694_v59 = vadd.f32 %v724_v54, %v693_v57 }
 0x2fc   :  { %705 = vst [vmem:[#allocation9 + $0x8] sm:$0xff] %v703_v58  ;;  %v702_v60 = vmax.f32 %v694_v59, 0.0 }
 0x2fe   :  { %704 = vst [vmem:[#allocation9] sm:$0xff] %v702_v60 }
 0x2ff   :  { %1102 = shalt.err (!%p1099_p5)
}
 0x300   :  { %717 = dma.vmem_to_hbm [thread:$0]  %s712_s10, 256, %s1315_s4, [#allocation5], %s1118_s18, %s1118_s18, %s1119_s19  }
 0x301   :  { %1115 = dma.done.wait [#allocation5], 256  }
 0x302   :  { %1116 = vsyncadd [#allocation5], 4294967040 }
 0x303   :  { %721 = vsyncpa [#allocation4], 1 }
 0x304   :  { %722 = vsyncpa [#allocation7], 1 }
 0x305   :  { %723 = vsyncpa [#allocation5], 1 }

</bundles_post_ra>
